<compile_context>
chip_gen: v7x
topology: tpu7x:2x2x1
jax: 0.10.0
libtpu: 0.0.40
codegen_flags: <defaults>
</compile_context>

<pallas_src>
import functools

import jax
import jax.numpy as jnp
from jax.experimental import pallas as pl
from jax.experimental.pallas import tpu as pltpu


def _mean_distance_kernel(x_ref, mask_ref, o_ref, *, w: int):
    """x_ref: (nb, H*W) channel-0 pixels of nb images, row-major flattened.
    mask_ref: (4, H*W) {0,1} masks: down/up/right/left neighbor exists.
    o_ref: (nb, H*W)."""
    x = x_ref[...]
    hw = x.shape[-1]
    m = mask_ref[...]

    # One vertical and one horizontal diff; the wrap-around values at the
    # borders are killed by the masks (matching replicate padding's zero
    # border difference).
    dv = jnp.abs(x - pltpu.roll(x, shift=hw - w, axis=1))   # |x[p] - x[p+W]|
    dh = jnp.abs(x - pltpu.roll(x, shift=hw - 1, axis=1))   # |x[p] - x[p+1]|

    out = (dv * m[0:1, :]                                   # |x - down|
           + pltpu.roll(dv, shift=w, axis=1) * m[1:2, :]    # |x - up|   (reuse dv)
           + dh * m[2:3, :]                                 # |x - right|
           + pltpu.roll(dh, shift=1, axis=1) * m[3:4, :])   # |x - left| (reuse dh)
    o_ref[...] = (0.25 * out).astype(o_ref.dtype)


def _border_masks(h: int, w: int, dtype) -> jax.Array:
    """(4, h*w) {0,1} masks: [down, up, right, left] neighbor exists."""
    p = jnp.arange(h * w, dtype=jnp.int32)
    row, col = p // w, p % w
    return jnp.stack([row < h - 1, row > 0, col < w - 1, col > 0]).astype(dtype)


def _pick_batch_block(n: int, hw: int, itemsize: int,
                      target_bytes: int = 1 << 20) -> int:
    """Images per grid step: big enough (~1 MiB tiles) to amortize per-step
    overhead, small enough that double-buffered in/out tiles stay well inside
    scoped VMEM on every TPU generation (16 MiB default on v5e)."""
    per_img = max(hw * itemsize, 1)
    nb = max(1, min(n, target_bytes // per_img))
    if nb < n and nb > 8:
        nb = (nb // 8) * 8          # sublane-friendly sub-batch tiles
    return nb


def mean_distancer(t: jax.Array) -> jax.Array:
    """t: (N, C, H, W), C >= 1 (the conv weights only read channel 0).
    Returns (N, 1, H, W) in t.dtype."""
    n, _, h, w = t.shape
    hw = h * w

    # Lane-dense layout: flatten the channel-0 plane so the last dim Pallas
    # sees is H*W (a multiple of 128 for typical images).
    x0 = t[:, 0, :, :].reshape(n, hw)
    masks = _border_masks(h, w, x0.dtype)

    nb = _pick_batch_block(n, hw, x0.dtype.itemsize)
    grid = (pl.cdiv(n, nb),)
    # TODO(synk): for very large single images (one image >> 1 MiB) add a
    # row-tile grid axis with a 1-row halo instead of whole-image tiles, and
    # split the grid so both v7x TensorCores get work when N is tiny.

    kernel = functools.partial(_mean_distance_kernel, w=w)
    out_flat = pl.pallas_call(
        kernel,
        out_shape=jax.ShapeDtypeStruct((n, hw), t.dtype),
        grid_spec=pltpu.PrefetchScalarGridSpec(
            num_scalar_prefetch=0,
            grid=grid,
            in_specs=[
                pl.BlockSpec((nb, hw), lambda i: (i, 0)),
                pl.BlockSpec((4, hw), lambda i: (0, 0)),
            ],
            out_specs=pl.BlockSpec((nb, hw), lambda i: (i, 0)),
        ),
        compiler_params=pltpu.CompilerParams(
            dimension_semantics=("parallel",),
            vmem_limit_bytes=32 * 1024 * 1024,
        ),
        cost_estimate=pl.CostEstimate(
            flops=12 * n * hw,
            transcendentals=0,
            bytes_accessed=(2 * n * hw + 4 * hw) * t.dtype.itemsize,
        ),
    )(x0, masks)

    return out_flat.reshape(n, 1, h, w)


def _reference(t: jax.Array) -> jax.Array:
    # Pure-JAX reference of the PyTorch module's math (replicate padding).
    x = t[:, 0:1, :, :]
    up    = jnp.concatenate([x[:, :, :1, :],  x[:, :, :-1, :]], axis=2)
    down  = jnp.concatenate([x[:, :, 1:, :],  x[:, :, -1:, :]], axis=2)
    left  = jnp.concatenate([x[:, :, :, :1],  x[:, :, :, :-1]], axis=3)
    right = jnp.concatenate([x[:, :, :, 1:],  x[:, :, :, -1:]], axis=3)
    return 0.25 * (jnp.abs(x - up) + jnp.abs(x - down)
                   + jnp.abs(x - left) + jnp.abs(x - right))


if __name__ == "__main__":
    key = jax.random.PRNGKey(0)
    # Conv2d(3, 1, ...) -> 3 input channels; small deterministic shapes.
    x = jax.random.normal(key, (2, 3, 16, 16), dtype=jnp.float32)

    out = jax.block_until_ready(mean_distancer(x))

    ref = _reference(x)
    assert out.shape == (2, 1, 16, 16)
    assert jnp.allclose(out, ref, atol=1e-6, rtol=1e-6)

    print("KERNEL_OK")
</pallas_src>

<mosaic_0001>
module attributes {stable_mosaic.version = 11 : i64} {
  func.func @_mean_distance_kernel(%arg0: i32, %arg1: memref<2x256xf32, #tpu.memory_space<vmem>>, %arg2: memref<4x256xf32, #tpu.memory_space<vmem>>, %arg3: memref<2x256xf32, #tpu.memory_space<vmem>>) attributes {dimension_semantics = [#tpu.dimension_semantics<parallel>], iteration_bounds = array<i64: 1>, scalar_prefetch = 0 : i64, scratch_operands = 0 : i64, tpu.core_type = #tpu.core_type<tc>, window_params = [{transform_indices = @transform_0, window_bounds = array<i64: 2, 256>}, {pipeline_mode = #tpu.pipeline_mode<synchronous>, transform_indices = @transform_1, window_bounds = array<i64: 4, 256>}, {transform_indices = @transform_2, window_bounds = array<i64: 2, 256>}]} {
    %c0 = arith.constant 0 : index
    %c0_0 = arith.constant 0 : index
    %0 = vector.load %arg1[%c0, %c0_0] : memref<2x256xf32, #tpu.memory_space<vmem>>, vector<2x256xf32>
    %c0_1 = arith.constant 0 : index
    %c0_2 = arith.constant 0 : index
    %1 = vector.load %arg2[%c0_1, %c0_2] : memref<4x256xf32, #tpu.memory_space<vmem>>, vector<4x256xf32>
    %c240_i32 = arith.constant 240 : i32
    %2 = tpu.dynamic_rotate %0 by %c240_i32 dim 1 : vector<2x256xf32>, i32 -> vector<2x256xf32>
    %3 = arith.subf %0, %2 : vector<2x256xf32>
    %4 = math.absf %3 : vector<2x256xf32>
    %c255_i32 = arith.constant 255 : i32
    %5 = tpu.dynamic_rotate %0 by %c255_i32 dim 1 : vector<2x256xf32>, i32 -> vector<2x256xf32>
    %6 = arith.subf %0, %5 : vector<2x256xf32>
    %7 = math.absf %6 : vector<2x256xf32>
    %8 = vector.extract_strided_slice %1 {offsets = [0, 0], sizes = [1, 256], strides = [1, 1]} : vector<4x256xf32> to vector<1x256xf32>
    %9 = vector.broadcast %8 : vector<1x256xf32> to vector<2x256xf32>
    %10 = arith.mulf %4, %9 : vector<2x256xf32>
    %c16_i32 = arith.constant 16 : i32
    %11 = tpu.dynamic_rotate %4 by %c16_i32 dim 1 : vector<2x256xf32>, i32 -> vector<2x256xf32>
    %12 = vector.extract_strided_slice %1 {offsets = [1, 0], sizes = [1, 256], strides = [1, 1]} : vector<4x256xf32> to vector<1x256xf32>
    %13 = vector.broadcast %12 : vector<1x256xf32> to vector<2x256xf32>
    %14 = arith.mulf %11, %13 : vector<2x256xf32>
    %15 = arith.addf %10, %14 : vector<2x256xf32>
    %16 = vector.extract_strided_slice %1 {offsets = [2, 0], sizes = [1, 256], strides = [1, 1]} : vector<4x256xf32> to vector<1x256xf32>
    %17 = vector.broadcast %16 : vector<1x256xf32> to vector<2x256xf32>
    %18 = arith.mulf %7, %17 : vector<2x256xf32>
    %19 = arith.addf %15, %18 : vector<2x256xf32>
    %c1_i32 = arith.constant 1 : i32
    %20 = tpu.dynamic_rotate %7 by %c1_i32 dim 1 : vector<2x256xf32>, i32 -> vector<2x256xf32>
    %21 = vector.extract_strided_slice %1 {offsets = [3, 0], sizes = [1, 256], strides = [1, 1]} : vector<4x256xf32> to vector<1x256xf32>
    %22 = vector.broadcast %21 : vector<1x256xf32> to vector<2x256xf32>
    %23 = arith.mulf %20, %22 : vector<2x256xf32>
    %24 = arith.addf %19, %23 : vector<2x256xf32>
    %cst = arith.constant 2.500000e-01 : f32
    %25 = vector.broadcast %cst : f32 to vector<2x256xf32>
    %26 = arith.mulf %25, %24 : vector<2x256xf32>
    %c0_3 = arith.constant 0 : index
    %c0_4 = arith.constant 0 : index
    %27 = vector.load %arg3[%c0_3, %c0_4] : memref<2x256xf32, #tpu.memory_space<vmem>>, vector<2x256xf32>
    tpu.vector_store %arg3[%c0_3, %c0_4], %26 {strides = array<i32>} : memref<2x256xf32, #tpu.memory_space<vmem>>, vector<2x256xf32>,
    return
  }
  func.func @transform_0(%arg0: i32) -> (i32, i32) {
    %c0_i32 = arith.constant 0 : i32
    %c0_i32_0 = arith.constant 0 : i32
    return %arg0, %c0_i32 : i32, i32
  }
  func.func @transform_1(%arg0: i32) -> (i32, i32) {
    %c0_i32 = arith.constant 0 : i32
    %c0_i32_0 = arith.constant 0 : i32
    %c0_i32_1 = arith.constant 0 : i32
    return %c0_i32, %c0_i32_0 : i32, i32
  }
  func.func @transform_2(%arg0: i32) -> (i32, i32) {
    %c0_i32 = arith.constant 0 : i32
    %c0_i32_0 = arith.constant 0 : i32
    return %arg0, %c0_i32 : i32, i32
  }
}

</mosaic_0001>

<bundles_post_ra>
// kernel: tpu_custom_call.1
= control target key start
LH: loop header
LB: loop body
LE: loop exit
PB: predicated region body
PF: predicated region fallthrough
CT: control target
= control target key end

     0   :  { %7 = vsyncpa [#allocation3], 0  ;;  %s438_s0 = inlined_call_operand.hbm [shape: f32[2,256], index: 0, kind: input, shape index: {}]   ;;  %s439_s1 = inlined_call_operand.hbm [shape: f32[4,256], index: 1, kind: input, shape index: {}]   ;;  %s440_s2 = inlined_call_operand.hbm [shape: f32[2,256], index: 2, kind: output, shape index: {}]  }
   0x1   :  { %8 = vsyncpa [#allocation6], 0 }
   0x2   :  { %9 = vsyncpa [#allocation4], 0  ;;  %s351_s9 = smov [#allocation2]   ;;  %s352_s11 = smov [#allocation5]  }
   0x3   :  { %s16_s10 = sshll.u32 %s351_s9, 4  ;;  %s26_s12 = sshll.u32 %s352_s11, 4  ;;  %s17_s10 = int_to_ptr.vmem [resolvable:$true] %s16_s10  ;;  %s27_s12 = int_to_ptr.vmem [resolvable:$true] %s26_s12 }
   0x4   :  { %s279_s15 = scalar_lea.hbm %s438_s0, 64 }
   0x5   :  { %p280_p0 = scmp.ne.s32.totalorder %s438_s0, %s279_s15  ;;  %p283_p1 = scmp.lt.u32.totalorder %s279_s15, %s438_s0 }
   0x7   :  { %p285_p2 = pnand %p283_p1, %p280_p0 }
   0x9   :  { %288 = shalt.err (!%p285_p2)
}
   0xa   :  { %s289_s20 = scalar_lea.vmem %s17_s10, 64  ;;  %p294_p4 = scmp.lt.s32.totalorder %s17_s10, %s17_s10 }
   0xb   :  { %p290_p3 = scmp.ne.s32.totalorder %s17_s10, %s289_s20  ;;  %p295_p5 = scmp.lt.s32.totalorder %s289_s20, %s289_s20 }
   0xd   :  { %p296_p6 = por %p295_p5, %p294_p4 }
   0xf   :  { %p297_p7 = pnand %p296_p6, %p290_p3 }
  0x11   :  { %300 = shalt.err (!%p297_p7)
}
  0x12   :  { %19 = dma.hbm_to_vmem [thread:$0]  %s438_s0, 64, %s17_s10, [#allocation3]  }
  0x13   :  { %s301_s25 = scalar_lea.hbm %s439_s1, 128 }
  0x14   :  { %p302_p8 = scmp.ne.s32.totalorder %s439_s1, %s301_s25  ;;  %p305_p9 = scmp.lt.u32.totalorder %s301_s25, %s439_s1 }
  0x16   :  { %p307_p10 = pnand %p305_p9, %p302_p8 }
  0x18   :  { %310 = shalt.err (!%p307_p10)
}
  0x19   :  { %s311_s30 = scalar_lea.vmem %s27_s12, 128  ;;  %p316_p12 = scmp.lt.s32.totalorder %s27_s12, %s27_s12 }
  0x1a   :  { %p312_p11 = scmp.ne.s32.totalorder %s27_s12, %s311_s30  ;;  %p317_p13 = scmp.lt.s32.totalorder %s311_s30, %s311_s30 }
  0x1c   :  { %p318_p0 = por %p317_p13, %p316_p12 }
  0x1e   :  { %p319_p1 = pnand %p318_p0, %p312_p11 }
  0x20   :  { %322 = shalt.err (!%p319_p1)
}
  0x21   :  { %29 = dma.hbm_to_vmem [thread:$0]  %s439_s1, 128, %s27_s12, [#allocation6]  }
  0x22   :  { %345 = dma.done.wait [#allocation3], 64  }
  0x23   :  { %346 = vsyncadd [#allocation3], 4294967232 }
  0x24   :  { %347 = dma.done.wait [#allocation6], 128  }
  0x25   :  { %348 = vsyncadd [#allocation6], 4294967168  ;;  %v42_v0 = vlaneseq  ;;  %v353_v1 = vmov 1983009808   ;;  %v36_v6 = vld [vmem:[#allocation2] sm:$0xf] }
  0x26   :  { %v40_v2 = vunpack.c.l.s4 %v353_v1  ;;  %s354_s4 = smov 127   ;;  %s355_s5 = smov 112   ;;  %v37_v32 = vld [vmem:[#allocation5] sm:$0xff] }
  0x27   :  { %v398_v3 = vshrl.u32 %v42_v0, 7  ;;  %v404_v9 = vand.u32 127, %v42_v0  ;;  %s356_s1 = smov 16   ;;  %s357_s6 = smov 1  }
  0x28   :  { %v41_v4 = vunpack.c.0.s8 %v40_v2  ;;  %s358_s7 = smov [#allocation7]  }
  0x29   :  { %vm75_vm0 = vcmp.lt.s32.totalorder %v404_v9, 127  ;;  %vm55_vm1 = vcmp.lt.s32.totalorder %v404_v9, 112  ;;  %v94_v30 = vsub.s32 0, %v398_v3  ;;  %v98_v31 = vsub.s32 4, %v398_v3  ;;  %s261_s8 = sshll.u32 %s358_s7, 4  ;;  %s262_s8 = int_to_ptr.vmem [resolvable:$true] %s261_s8 }
  0x2a   :  { %v401_v5 = vsub.s32 %v41_v4, %v398_v3  ;;  %v174_v33 = vsub.s32 2, %v398_v3  ;;  %v178_v34 = vsub.s32 6, %v398_v3  ;;  %v142_v37 = vsub.s32 1, %v398_v3  ;;  %s323_s9 = scalar_lea.vmem %s262_s8, 64  ;;  %p328_p3 = scmp.lt.s32.totalorder %s262_s8, %s262_s8 }
  0x2b   :  { %v95_v35 = vrot.slane %v37_v32, %v94_v30  ;;  %v99_v36 = vrot.slane %v37_v32, %v98_v31  ;;  %v146_v38 = vsub.s32 5, %v398_v3  ;;  %v223_v45 = vsub.s32 3, %v398_v3  ;;  %p324_p2 = scmp.ne.s32.totalorder %s262_s8, %s323_s9  ;;  %p329_p4 = scmp.lt.s32.totalorder %s323_s9, %s323_s9 }
  0x2c   :  { %v45_v7 = vrot.slane %v36_v6, %v401_v5  ;;  %v175_v39 = vrot.slane %v37_v32, %v174_v33  ;;  %v179_v40 = vrot.slane %v37_v32, %v178_v34  ;;  %v143_v43 = vrot.slane %v37_v32, %v142_v37 }
  0x2d   :  { %v105_v41 = vrot.slane %v95_v35, %v94_v30  ;;  %v109_v42 = vrot.slane %v99_v36, %v94_v30  ;;  %v147_v44 = vrot.slane %v37_v32, %v146_v38  ;;  %v227_v46 = vsub.s32 7, %v398_v3  ;;  %p330_p5 = por %p329_p4, %p328_p3 }
  0x2e   :  { %71 = vrot.lane.b32.xlu1 %v45_v7, %s354_s4  ;;  %49 = vrot.lane.b32.xlu0 %v45_v7, %s355_s5  ;;  %v46_v8 = vcombine.high %v45_v7, %v45_v7  ;;  %v185_v47 = vrot.slane %v175_v39, %v174_v33  ;;  %v189_v48 = vrot.slane %v179_v40, %v174_v33  ;;  %vm137_vm2 = vcmp.lt.s32.totalorder %v404_v9, 16 }
  0x2f   :  { %v112_v49 = vcombine.low %v105_v41, %v109_v42  ;;  %v153_v51 = vrot.slane %v143_v43, %v142_v37  ;;  %v157_v52 = vrot.slane %v147_v44, %v142_v37  ;;  %v224_v53 = vrot.slane %v37_v32, %v223_v45  ;;  %p331_p6 = pnand %p330_p5, %p324_p2 }
  0x30   :  { %v228_v54 = vrot.slane %v37_v32, %v227_v46  ;;  %v192_v55 = vcombine.low %v185_v47, %v189_v48  ;;  %vm218_vm3 = vcmp.lt.s32.totalorder %v404_v9, 1 }
  0x31   :  { %v119_v57 = vrot.slane %v112_v49, %v401_v5  ;;  %v234_v62 = vrot.slane %v224_v53, %v223_v45 }
  0x32   :  { %73 = vrot.lane.b32.xlu1 %v46_v8, %s354_s4  ;;  %51 = vrot.lane.b32.xlu0 %v46_v8, %s355_s5  ;;  %v238_v63 = vrot.slane %v228_v54, %v223_v45  ;;  %v199_v0 = vrot.slane %v192_v55, %v401_v5 }
  0xa0   :  { %v72_v10 = vpop.permute.xlu1 %71  ;;  %v50_v11 = vpop.permute.xlu0 %49 }
  0xa4   :  { %v74_v12 = vpop.permute.xlu1 %73  ;;  %v52_v13 = vpop.permute.xlu0 %51 }
  0xa5   :  { %v76_v14 = vsel %vm75_vm0, %v72_v10, %v74_v12  ;;  %v77_v15 = vsel %vm75_vm0, %v74_v12, %v72_v10  ;;  %v56_v16 = vsel %vm55_vm1, %v50_v11, %v52_v13  ;;  %v57_v17 = vsel %vm55_vm1, %v52_v13, %v50_v11 }
  0xa6   :  { %v80_v18 = vcombine.low %v76_v14, %v77_v15  ;;  %v60_v19 = vcombine.low %v56_v16, %v57_v17 }
  0xa8   :  { %v87_v20 = vrot.slane %v80_v18, %v401_v5  ;;  %v67_v21 = vrot.slane %v60_v19, %v401_v5 }
  0xaa   :  { %v69_v22 = vsub.f32 %v36_v6, %v67_v21  ;;  %v89_v23 = vsub.f32 %v36_v6, %v87_v20 }
  0xac   :  { %v70_v24 = vand.u32 2147483647, %v69_v22  ;;  %v90_v25 = vand.u32 2147483647, %v89_v23 }
  0xae   :  { %v129_v26 = vrot.slane %v70_v24, %v401_v5  ;;  %v210_v28 = vrot.slane %v90_v25, %v401_v5  ;;  %v121_v7 = vmul.f32 %v119_v57, %v70_v24  ;;  %v201_v12 = vmul.f32 %v199_v0, %v90_v25 }
  0xb0   :  { %133 = vrot.lane.b32.xlu0 %v129_v26, %s356_s1  ;;  %v130_v27 = vcombine.high %v129_v26, %v129_v26  ;;  %v211_v29 = vcombine.high %v210_v28, %v210_v28 }
  0xb2   :  { %135 = vrot.lane.b32.xlu1 %v130_v27, %s356_s1 }
  0xb4   :  { %214 = vrot.lane.b32.xlu0 %v210_v28, %s357_s6 }
  0xb6   :  { %216 = vrot.lane.b32.xlu1 %v211_v29, %s357_s6 }
 0x122   :  { %v134_v50 = vpop.permute.xlu0 %133 }
 0x124   :  { %v136_v56 = vpop.permute.xlu1 %135 }
 0x125   :  { %v138_v58 = vsel %vm137_vm2, %v134_v50, %v136_v56  ;;  %v139_v59 = vsel %vm137_vm2, %v136_v56, %v134_v50 }
 0x126   :  { %v158_v60 = vmul.f32 %v153_v51, %v139_v59  ;;  %v159_v61 = vmul.f32 %v157_v52, %v138_v58  ;;  %v215_v2 = vpop.permute.xlu0 %214 }
 0x128   :  { %v162_v1 = vcombine.low %v158_v60, %v159_v61  ;;  %v217_v3 = vpop.permute.xlu1 %216 }
 0x129   :  { %v219_v4 = vsel %vm218_vm3, %v215_v2, %v217_v3  ;;  %v220_v6 = vsel %vm218_vm3, %v217_v3, %v215_v2 }
 0x12a   :  { %v169_v8 = vrot.slane %v162_v1, %v401_v5  ;;  %v239_v10 = vmul.f32 %v234_v62, %v220_v6  ;;  %v240_v11 = vmul.f32 %v238_v63, %v219_v4 }
 0x12c   :  { %v243_v13 = vcombine.low %v239_v10, %v240_v11  ;;  %v171_v14 = vadd.f32 %v169_v8, %v121_v7 }
 0x12e   :  { %v202_v9 = vadd.f32 %v201_v12, %v171_v14  ;;  %v250_v15 = vrot.slane %v243_v13, %v401_v5 }
 0x130   :  { %v252_v16 = vadd.f32 %v250_v15, %v202_v9 }
 0x132   :  { %v253_v17 = vmul.f32 0.25, %v252_v16 }
 0x134   :  { %254 = vst [vmem:[#allocation7] sm:$0xf] %v253_v17 }
 0x135   :  { %334 = shalt.err (!%p331_p6)
}
 0x136   :  { %s335_s12 = scalar_lea.hbm %s440_s2, 64 }
 0x137   :  { %p336_p7 = scmp.ne.s32.totalorder %s440_s2, %s335_s12  ;;  %p339_p8 = scmp.lt.u32.totalorder %s335_s12, %s440_s2 }
 0x139   :  { %p341_p9 = pnand %p339_p8, %p336_p7 }
 0x13b   :  { %344 = shalt.err (!%p341_p9)
}
 0x13c   :  { %264 = dma.vmem_to_hbm [thread:$0]  %s262_s8, 64, %s440_s2, [#allocation4]  }
 0x13d   :  { %349 = dma.done.wait [#allocation4], 64  }
 0x13e   :  { %350 = vsyncadd [#allocation4], 4294967232 }
 0x13f   :  { %268 = vsyncpa [#allocation3], 1 }
 0x140   :  { %269 = vsyncpa [#allocation6], 1 }
 0x141   :  { %270 = vsyncpa [#allocation4], 1 }

</bundles_post_ra>
